<compile_context>
chip_gen: v5e
topology: v5e:2x2
jax: 0.10.0
libtpu: 0.0.40
codegen_flags: <defaults>
</compile_context>

<pallas_src>
import functools

import jax
import jax.numpy as jnp
from jax.experimental import pallas as pl
from jax.experimental.pallas import tpu as pltpu


def _round_up(x, m):
    return ((x + m - 1) // m) * m


def _chip_info():
    """Returns (vmem_per_tensorcore_bytes, num_tensorcores_sharing_grid)."""
    vmem = 64 * 1024 * 1024  # conservative default (v7x per-TC VMEM)
    try:
        vmem = int(pltpu.get_tpu_info().vmem_capacity_bytes)
    except Exception:
        pass
    num_tc = 1
    try:
        kind = jax.devices()[0].device_kind.lower()
        # Chips whose "parallel" grid axes are split across 2 TensorCores.
        if ("v4" in kind) or ("v5p" in kind) or ("7" in kind):
            num_tc = 2
        # v7x has 64 MiB per TensorCore; clamp in case the query reports
        # per-chip (128 MiB) memory.
        if "7" in kind:
            vmem = min(vmem, 64 * 1024 * 1024)
    except Exception:
        pass
    return vmem, num_tc


def _pick_row_block(n_rows, d, itemsize, vmem_bytes, num_tc):
    """Pick the row-tile size tm for an (n_rows, d) LayerNorm."""
    # Sublane multiple: 8 for 4-byte dtypes, 16 for 2-byte (bf16) dtypes.
    mult = 8 if itemsize >= 4 else 16
    # Per-row VMEM footprint:
    #   double-buffered input + output tiles:         4 * d * itemsize
    #   ~3 f32 intermediates (x_f32, centered, y):    3 * d * 4
    bytes_per_row = 4 * d * itemsize + 3 * d * 4
    # Total-footprint budget: quarter of per-TC VMEM (generous headroom for
    # Mosaic internal scratch and neighboring fusions on every generation).
    tile_budget = max(2 * 1024 * 1024, vmem_bytes // 4)
    tm = tile_budget // max(1, bytes_per_row)
    tm = max(mult, (tm // mult) * mult)
    # Hundreds of rows amortize the ~0.35us/step overhead; beyond ~1024 rows
    # there is no further bandwidth gain.
    tm = min(tm, 1024)
    # Minimum grid steps: 2 per TensorCore.  On 1-TC chips (v5e/v6e) that
    # just keeps the pipeline overlapped; on 2-TC chips (v7x) it also lets
    # dimension_semantics=("parallel",) split rows evenly across both cores.
    min_steps = 2 * num_tc
    if n_rows > min_steps * mult:
        tm = min(tm, max(mult, _round_up(pl.cdiv(n_rows, min_steps), mult)))
    # Never larger than the (sublane-rounded) number of rows.
    tm = min(tm, _round_up(n_rows, mult))
    return tm, bytes_per_row


def _layernorm_kernel(x_ref, gamma_ref, beta_ref, o_ref, *, eps, inv_d):
    # x_ref: (TM, D) block of token rows; gamma/beta: (1, D) f32.
    x = x_ref[...].astype(jnp.float32)
    # Fused reductions: both cross-lane sums issue to the XLU before the
    # elementwise chain; var = E[x^2] - mean^2 (biased, matches torch).
    s1 = jnp.sum(x, axis=-1, keepdims=True)
    s2 = jnp.sum(x * x, axis=-1, keepdims=True)
    mean = s1 * inv_d
    var = s2 * inv_d - mean * mean
    inv_std = jax.lax.rsqrt(var + eps)
    y = (x - mean) * inv_std * gamma_ref[...] + beta_ref[...]
    o_ref[...] = y.astype(o_ref.dtype)


def layernorm_pallas(x, gamma, beta, *, eps=1e-5, row_block=None):
    """LayerNorm over the last dim of x (any leading shape) via Pallas."""
    orig_shape = x.shape
    d = orig_shape[-1]
    n = 1
    for s in orig_shape[:-1]:
        n *= s
    x2 = x.reshape(n, d)

    itemsize = jnp.dtype(x.dtype).itemsize
    vmem_bytes, num_tc = _chip_info()
    tm, bytes_per_row = _pick_row_block(n, d, itemsize, vmem_bytes, num_tc)
    if row_block is not None:
        tm = row_block

    # Scoped-VMEM limit: need-based (tiles + f32 temps + gamma/beta + cushion),
    # clamped to 3/4 of the per-TC capacity.  The 8 MiB floor only covers
    # v5e's tiny 16 MiB default when tiles are themselves small.
    need = tm * bytes_per_row + 4 * d * 4 + (2 << 20)
    vmem_limit = int(min(max(need, 8 * 1024 * 1024), int(0.75 * vmem_bytes)))

    # gamma/beta cast to f32 once, outside the kernel.
    gamma2 = gamma.reshape(1, d).astype(jnp.float32)
    beta2 = beta.reshape(1, d).astype(jnp.float32)

    grid = (pl.cdiv(n, tm),)  # ragged last block handled by Pallas (no pad/slice)

    out = pl.pallas_call(
        functools.partial(_layernorm_kernel, eps=eps, inv_d=1.0 / d),
        out_shape=jax.ShapeDtypeStruct((n, d), x.dtype),
        grid_spec=pltpu.PrefetchScalarGridSpec(
            num_scalar_prefetch=0,
            grid=grid,
            in_specs=[
                pl.BlockSpec((tm, d), lambda i: (i, 0)),
                pl.BlockSpec((1, d), lambda i: (0, 0)),
                pl.BlockSpec((1, d), lambda i: (0, 0)),
            ],
            out_specs=pl.BlockSpec((tm, d), lambda i: (i, 0)),
        ),
        compiler_params=pltpu.CompilerParams(
            dimension_semantics=("parallel",),
            vmem_limit_bytes=vmem_limit,
        ),
    )(x2, gamma2, beta2)

    return out.reshape(orig_shape)


class PreNormPallas:
    """JAX/Pallas equivalent of the PyTorch PreNorm module."""

    def __init__(self, dimension, fn, gamma=None, beta=None, eps=1e-5):
        # nn.LayerNorm defaults: weight=1, bias=0, eps=1e-5 (trained weights
        # can be threaded through via gamma/beta).
        self.gamma = (jnp.ones((dimension,), dtype=jnp.float32)
                      if gamma is None else jnp.asarray(gamma, jnp.float32))
        self.beta = (jnp.zeros((dimension,), dtype=jnp.float32)
                     if beta is None else jnp.asarray(beta, jnp.float32))
        self.eps = eps
        self.fn = fn

    def __call__(self, x, **kwargs):
        return self.fn(layernorm_pallas(x, self.gamma, self.beta, eps=self.eps),
                       **kwargs)


if __name__ == "__main__":
    key = jax.random.PRNGKey(0)
    batch, seq, dim = 2, 8, 32
    k_x, k_w = jax.random.split(key)

    x = jax.random.normal(k_x, (batch, seq, dim), dtype=jnp.float32)

    # Deterministic example `fn`: a small linear projection (stands in for the
    # wrapped Attention / FeedForward module of ViViT). Plain-JAX glue.
    w = jax.random.normal(k_w, (dim, dim), dtype=jnp.float32) * 0.02
    fn = lambda t: t @ w

    prenorm = PreNormPallas(dim, fn)
    out = prenorm(x)
    out = jax.block_until_ready(out)

    # Reference check (pure JAX LayerNorm + fn)
    mean = jnp.mean(x, axis=-1, keepdims=True)
    var = jnp.mean((x - mean) ** 2, axis=-1, keepdims=True)
    ref = fn((x - mean) * jax.lax.rsqrt(var + 1e-5))
    assert out.shape == (batch, seq, dim)
    assert jnp.max(jnp.abs(out - ref)) < 1e-4

    print("KERNEL_OK")
</pallas_src>

<mosaic_0001>
module attributes {stable_mosaic.version = 11 : i64} {
  func.func @_layernorm_kernel(%arg0: i32, %arg1: memref<16x32xf32, #tpu.memory_space<vmem>>, %arg2: memref<1x32xf32, #tpu.memory_space<vmem>>, %arg3: memref<1x32xf32, #tpu.memory_space<vmem>>, %arg4: memref<16x32xf32, #tpu.memory_space<vmem>>) attributes {dimension_semantics = [#tpu.dimension_semantics<parallel>], iteration_bounds = array<i64: 1>, scalar_prefetch = 0 : i64, scratch_operands = 0 : i64, tpu.core_type = #tpu.core_type<tc>, window_params = [{transform_indices = @transform_0, window_bounds = array<i64: 16, 32>}, {pipeline_mode = #tpu.pipeline_mode<synchronous>, transform_indices = @transform_1, window_bounds = array<i64: 1, 32>}, {pipeline_mode = #tpu.pipeline_mode<synchronous>, transform_indices = @transform_2, window_bounds = array<i64: 1, 32>}, {transform_indices = @transform_3, window_bounds = array<i64: 16, 32>}]} {
    %c0 = arith.constant 0 : index
    %c0_0 = arith.constant 0 : index
    %0 = vector.load %arg1[%c0, %c0_0] : memref<16x32xf32, #tpu.memory_space<vmem>>, vector<16x32xf32>
    %cst = arith.constant dense<0.000000e+00> : vector<16xf32>
    %1 = vector.multi_reduction <add>, %0, %cst [1] : vector<16x32xf32> to vector<16xf32>
    %2 = vector.shape_cast %1 : vector<16xf32> to vector<16x1xf32>
    %3 = arith.mulf %0, %0 : vector<16x32xf32>
    %cst_1 = arith.constant dense<0.000000e+00> : vector<16xf32>
    %4 = vector.multi_reduction <add>, %3, %cst_1 [1] : vector<16x32xf32> to vector<16xf32>
    %5 = vector.shape_cast %4 : vector<16xf32> to vector<16x1xf32>
    %cst_2 = arith.constant 3.125000e-02 : f32
    %6 = vector.broadcast %cst_2 : f32 to vector<16x1xf32>
    %7 = arith.mulf %2, %6 : vector<16x1xf32>
    %cst_3 = arith.constant 3.125000e-02 : f32
    %8 = vector.broadcast %cst_3 : f32 to vector<16x1xf32>
    %9 = arith.mulf %5, %8 : vector<16x1xf32>
    %10 = arith.mulf %7, %7 : vector<16x1xf32>
    %11 = arith.subf %9, %10 : vector<16x1xf32>
    %cst_4 = arith.constant 9.99999974E-6 : f32
    %12 = vector.broadcast %cst_4 : f32 to vector<16x1xf32>
    %13 = arith.addf %11, %12 : vector<16x1xf32>
    %14 = math.rsqrt %13 : vector<16x1xf32>
    %15 = vector.broadcast %7 : vector<16x1xf32> to vector<16x32xf32>
    %16 = arith.subf %0, %15 : vector<16x32xf32>
    %17 = vector.broadcast %14 : vector<16x1xf32> to vector<16x32xf32>
    %18 = arith.mulf %16, %17 : vector<16x32xf32>
    %c0_5 = arith.constant 0 : index
    %c0_6 = arith.constant 0 : index
    %19 = vector.load %arg2[%c0_5, %c0_6] : memref<1x32xf32, #tpu.memory_space<vmem>>, vector<1x32xf32>
    %20 = vector.broadcast %19 : vector<1x32xf32> to vector<16x32xf32>
    %21 = arith.mulf %18, %20 : vector<16x32xf32>
    %c0_7 = arith.constant 0 : index
    %c0_8 = arith.constant 0 : index
    %22 = vector.load %arg3[%c0_7, %c0_8] : memref<1x32xf32, #tpu.memory_space<vmem>>, vector<1x32xf32>
    %23 = vector.broadcast %22 : vector<1x32xf32> to vector<16x32xf32>
    %24 = arith.addf %21, %23 : vector<16x32xf32>
    %c0_9 = arith.constant 0 : index
    %c0_10 = arith.constant 0 : index
    %25 = vector.load %arg4[%c0_9, %c0_10] : memref<16x32xf32, #tpu.memory_space<vmem>>, vector<16x32xf32>
    tpu.vector_store %arg4[%c0_9, %c0_10], %24 {strides = array<i32>} : memref<16x32xf32, #tpu.memory_space<vmem>>, vector<16x32xf32>,
    return
  }
  func.func @transform_0(%arg0: i32) -> (i32, i32) {
    %c0_i32 = arith.constant 0 : i32
    %c0_i32_0 = arith.constant 0 : i32
    return %arg0, %c0_i32 : i32, i32
  }
  func.func @transform_1(%arg0: i32) -> (i32, i32) {
    %c0_i32 = arith.constant 0 : i32
    %c0_i32_0 = arith.constant 0 : i32
    %c0_i32_1 = arith.constant 0 : i32
    return %c0_i32, %c0_i32_0 : i32, i32
  }
  func.func @transform_2(%arg0: i32) -> (i32, i32) {
    %c0_i32 = arith.constant 0 : i32
    %c0_i32_0 = arith.constant 0 : i32
    %c0_i32_1 = arith.constant 0 : i32
    return %c0_i32, %c0_i32_0 : i32, i32
  }
  func.func @transform_3(%arg0: i32) -> (i32, i32) {
    %c0_i32 = arith.constant 0 : i32
    %c0_i32_0 = arith.constant 0 : i32
    return %arg0, %c0_i32 : i32, i32
  }
}

</mosaic_0001>

<bundles_post_ra>
// kernel: tpu_custom_call.1
= control target key start
LH: loop header
LB: loop body
LE: loop exit
PB: predicated region body
PF: predicated region fallthrough
CT: control target
= control target key end

     0   :  { %8 = vsyncpa [#allocation3], 0  ;;  %s268_s0 = inlined_call_operand.hbm [shape: f32[16,32], index: 0, kind: input, shape index: {}]   ;;  %s269_s1 = inlined_call_operand.hbm [shape: f32[1,32], index: 1, kind: input, shape index: {}]   ;;  %s270_s2 = inlined_call_operand.vmem [shape: f32[1,32], index: 2, kind: input, shape index: {}]   ;;  %s271_s3 = inlined_call_operand.hbm [shape: f32[16,32], index: 3, kind: output, shape index: {}]  }
   0x1   :  { %9 = vsyncpa [#allocation6], 0 }
   0x2   :  { %10 = vsyncpa [#allocation4], 0  ;;  %s15_s14 = sshll.u32 %s268_s0, 4  ;;  %s219_s15 = smov [#allocation2]   ;;  %s16_s14 = int_to_ptr.hbm [resolvable:$true] %s15_s14 }
   0x3   :  { %s17_s16 = sshll.u32 %s219_s15, 4  ;;  %s29_s19 = sshll.u32 %s269_s1, 4  ;;  %s18_s16 = int_to_ptr.vmem [resolvable:$true] %s17_s16  ;;  %s30_s19 = int_to_ptr.hbm [resolvable:$true] %s29_s19 }
   0x4   :  { %s220_s20 = smov 128   ;;  %s221_s21 = smov 8  }
   0x5   :  { %23 = dma.hbm_to_vmem [thread:$0]  %s16_s14, 256, %s18_s16, [#allocation3], %s220_s20, %s220_s20, %s221_s21  }
   0x6   :  { %s222_s22 = smov [#allocation5]  }
   0x7   :  { %s31_s23 = sshll.u32 %s222_s22, 4  ;;  %s32_s23 = int_to_ptr.vmem [resolvable:$true] %s31_s23 }
   0x8   :  { %34 = dma.hbm_to_vmem [thread:$0]  %s30_s19, 16, %s32_s23, [#allocation6]  }
   0x9   :  { %213 = dma.done.wait [#allocation3], 256  }
   0xa   :  { %214 = vsyncadd [#allocation3], 4294967040 }
   0xb   :  { %215 = dma.done.wait [#allocation6], 16  }
   0xc   :  { %216 = vsyncadd [#allocation6], 4294967280  ;;  %vm47_vm0 = vcmask 261120   ;;  %v45_v0 = vld [vmem:[#allocation2] sm:$0xff]  ;;  %v46_v3 = vld [vmem:[#allocation2 + $0x8] sm:$0xff]  ;;  %s223_s24 = smov [#allocation7]  }
   0xd   :  { %v48_v1 = vsel %vm47_vm0, %v45_v0, 0.0  ;;  %v54_v2 = vmul.f32 %v45_v0, %v45_v0  ;;  %v55_v5 = vmul.f32 %v46_v3, %v46_v3  ;;  %v51_v6 = vsel %vm47_vm0, %v46_v3, 0.0  ;;  %v135_v31 = vld [vmem:[#allocation5] ss:$0 sm:$0xff]  ;;  %v136_v35 = vld [vmem:[%s270_s2] ss:$0 sm:$0xff] }
   0xe   :  { %49 = vadd.xlane.f32.xlu0 %v48_v1  ;;  %s114_s25 = sshll.u32 %s223_s24, 4  ;;  %s116_s28 = sshll.u32 %s271_s3, 4  ;;  %s115_s25 = int_to_ptr.vmem [resolvable:$true] %s114_s25  ;;  %s117_s28 = int_to_ptr.hbm [resolvable:$true] %s116_s28 }
   0xf   :  { %v56_v4 = vsel %vm47_vm0, %v54_v2, 0.0  ;;  %v59_v7 = vsel %vm47_vm0, %v55_v5, 0.0 }
  0x10   :  { %57 = vadd.xlane.f32.xlu1 %v56_v4 }
  0x16   :  { %52 = vadd.xlane.f32.xlu0 %v51_v6 }
  0x18   :  { %60 = vadd.xlane.f32.xlu1 %v59_v7 }
  0x81   :  { %v50_v8 = vpop.xlane.xlu0 %49 }
  0x82   :  { %v62_v9 = vmul.f32 0.03125, %v50_v8 }
  0x83   :  { %v58_v10 = vpop.xlane.xlu1 %57 }
  0x84   :  { %v66_v11 = vmul.f32 %v62_v9, %v62_v9  ;;  %v64_v12 = vmul.f32 0.03125, %v58_v10  ;;  %v92_v30 = vsub.f32 %v45_v0, %v62_v9 }
  0x86   :  { %v68_v13 = vsub.f32 %v64_v12, %v66_v11 }
  0x88   :  { %v70_v14 = vadd.f32 1e-05, %v68_v13 }
  0x89   :  { %v53_v15 = vpop.xlane.xlu0 %52 }
  0x8a   :  { %137 = vrsqrt.f32 %v70_v14  ;;  %v63_v16 = vmul.f32 0.03125, %v53_v15  ;;  %vm78_vm2 = vweird.f32 %v70_v14 }
  0x8b   :  { %v61_v17 = vpop.xlane.xlu1 %60 }
  0x8c   :  { %v67_v18 = vmul.f32 %v63_v16, %v63_v16  ;;  %v65_v19 = vmul.f32 0.03125, %v61_v17  ;;  %v93_v41 = vsub.f32 %v46_v3, %v63_v16 }
  0x8e   :  { %v69_v20 = vsub.f32 %v65_v19, %v67_v18 }
  0x90   :  { %v138_v21 = vpop.eup %137  ;;  %v71_v22 = vadd.f32 1e-05, %v69_v20 }
  0x91   :  { %v73_v23 = vmul.f32 %v138_v21, %v70_v14  ;;  %vm79_vm1 = vweird.f32 %v138_v21 }
  0x92   :  { %139 = vrsqrt.f32 %v71_v22  ;;  %vm80_vm3 = vmor %vm78_vm2, %vm79_vm1  ;;  %vm88_vm5 = vweird.f32 %v71_v22 }
  0x93   :  { %v74_v24 = vmul.f32 %v138_v21, %v73_v23 }
  0x95   :  { %v75_v25 = vmul.f32 0.5, %v74_v24 }
  0x97   :  { %v76_v26 = vsub.f32 1.5, %v75_v25 }
  0x98   :  { %v140_v27 = vpop.eup %139 }
  0x99   :  { %v77_v28 = vmul.f32 %v138_v21, %v76_v26  ;;  %v83_v29 = vmul.f32 %v140_v27, %v71_v22  ;;  %vm89_vm4 = vweird.f32 %v140_v27 }
  0x9a   :  { %vm90_vm6 = vmor %vm88_vm5, %vm89_vm4 }
  0x9b   :  { %v81_v32 = vsel %vm80_vm3, %v138_v21, %v77_v28  ;;  %v84_v33 = vmul.f32 %v140_v27, %v83_v29 }
  0x9c   :  { %v94_v34 = vmul.f32 %v92_v30, %v81_v32 }
  0x9d   :  { %v85_v36 = vmul.f32 0.5, %v84_v33 }
  0x9e   :  { %v100_v37 = vmul.f32 %v135_v31, %v94_v34 }
  0x9f   :  { %v86_v38 = vsub.f32 1.5, %v85_v36 }
  0xa0   :  { %v106_v39 = vadd.f32 %v136_v35, %v100_v37 }
  0xa1   :  { %v87_v40 = vmul.f32 %v140_v27, %v86_v38 }
  0xa2   :  { %108 = vst.msk [vmem:[#allocation7] sm:$0xff] %vm47_vm0, %v106_v39 }
  0xa3   :  { %v91_v42 = vsel %vm90_vm6, %v140_v27, %v87_v40 }
  0xa4   :  { %v95_v43 = vmul.f32 %v93_v41, %v91_v42 }
  0xa6   :  { %v101_v44 = vmul.f32 %v135_v31, %v95_v43 }
  0xa8   :  { %v107_v45 = vadd.f32 %v136_v35, %v101_v44 }
  0xaa   :  { %109 = vst.msk [vmem:[#allocation7 + $0x8] sm:$0xff] %vm47_vm0, %v107_v45 }
  0xab   :  { %122 = dma.vmem_to_hbm [thread:$0]  %s115_s25, 256, %s117_s28, [#allocation4], %s220_s20, %s220_s20, %s221_s21  }
  0xac   :  { %217 = dma.done.wait [#allocation4], 256  }
  0xad   :  { %218 = vsyncadd [#allocation4], 4294967040 }
  0xae   :  { %127 = vsyncpa [#allocation3], 1 }
  0xaf   :  { %128 = vsyncpa [#allocation6], 1 }
  0xb0   :  { %129 = vsyncpa [#allocation4], 1 }

</bundles_post_ra>
